<compile_context>
chip_gen: v5e
topology: v5e:2x2
jax: 0.10.0
libtpu: 0.0.40
codegen_flags: <defaults>
</compile_context>

<pallas_src>
import jax
import jax.numpy as jnp
from jax import lax
from jax.experimental import pallas as pl
from jax.experimental.pallas import tpu as pltpu


def _round_up(x, m):
    return (x + m - 1) // m * m


def critic_kernel(s_ref, a_ref, w1s_t_ref, w1a_t_ref, b1_ref,
                  w2_t_ref, b2_ref, w3_t_ref, b3_ref, out_ref):
    s = s_ref[...]            # (tile_b, state_dim)
    a = a_ref[...]            # (tile_b, action_dim)

    # Contract the feature axis of both operands: (16, D) x (tile_b, D)^T
    # -> (16, tile_b). Batch stays on the lane axis the whole way down.
    contract_last = (((1,), (1,)), ((), ()))

    # fc1 (split over the virtual concat boundary) + relu
    h1 = (lax.dot_general(w1s_t_ref[...], s, contract_last,
                          preferred_element_type=jnp.float32)
          + lax.dot_general(w1a_t_ref[...], a, contract_last,
                            preferred_element_type=jnp.float32)
          + b1_ref[...])                      # (16, 1) broadcasts over lanes
    h1 = jnp.maximum(h1, 0.0)                 # (16, tile_b)

    # fc2 + relu
    h2 = jnp.dot(w2_t_ref[...], h1, preferred_element_type=jnp.float32) \
        + b2_ref[...]
    h2 = jnp.maximum(h2, 0.0)                 # (16, tile_b)

    # fc3 (no activation)
    q = jnp.dot(w3_t_ref[...], h2, preferred_element_type=jnp.float32) \
        + b3_ref[...]                         # (1, tile_b) -- lane-dense store
    out_ref[...] = q.astype(out_ref.dtype)


def critic_forward(state, action, params, *, tile_b_max=8192):
    """Pallas wrapper: no concat, no pad, lane-dense transposed output."""
    B, state_dim = state.shape
    Ba, action_dim = action.shape
    assert B == Ba
    w1, b1, w2, b2, w3, b3 = params
    hidden = w2.shape[0]

    # Trace-time transposes of the tiny weights (batch-on-lanes layout).
    w1s_t = w1[:state_dim].T        # (hidden, state_dim)
    w1a_t = w1[state_dim:].T        # (hidden, action_dim)
    b1_t = b1.T                     # (hidden, 1)
    w2_t = w2.T                     # (hidden, hidden)
    b2_t = b2.T                     # (hidden, 1)
    w3_t = w3.T                     # (1, hidden)
    b3_t = b3.T                     # (1, 1)

    # Tile: multiple of 128 (lane-dense output blocks); aim for >= 2 grid
    # steps on larger batches so v7x's two TensorCores both get work.
    tile_b = min(tile_b_max, _round_up(-(-B // 2), 128))
    num_tiles = -(-B // tile_b)           # cdiv; ragged last block is masked
    out_cols = num_tiles * tile_b

    def stream_spec(cols):
        # Batch-tiled, double-buffered input blocks.
        return pl.BlockSpec((tile_b, cols), lambda i: (i, 0))

    def resident_spec(arr):
        # Constant block index -> stays VMEM-resident across grid steps.
        return pl.BlockSpec(arr.shape, lambda i: (0, 0))

    weight_bytes = sum(int(p.size) * p.dtype.itemsize
                       for p in (w1s_t, w1a_t, b1_t, w2_t, b2_t, w3_t, b3_t))
    flops = 2 * out_cols * (state_dim * hidden + action_dim * hidden
                            + hidden * hidden + hidden * 1)
    bytes_accessed = (out_cols * (state_dim + action_dim + 1) * 4
                      + weight_bytes)

    out = pl.pallas_call(
        critic_kernel,
        out_shape=jax.ShapeDtypeStruct((1, out_cols), jnp.float32),
        grid=(num_tiles,),
        in_specs=[
            stream_spec(state_dim),       # state  (tile_b, state_dim)
            stream_spec(action_dim),      # action (tile_b, action_dim)
            resident_spec(w1s_t),
            resident_spec(w1a_t),
            resident_spec(b1_t),
            resident_spec(w2_t),
            resident_spec(b2_t),
            resident_spec(w3_t),
            resident_spec(b3_t),
        ],
        out_specs=pl.BlockSpec((1, tile_b), lambda i: (0, i)),
        compiler_params=pltpu.CompilerParams(
            dimension_semantics=("parallel",),      # v7x: batch over 2 TCs
            vmem_limit_bytes=48 * 1024 * 1024),     # safe on v5e/v6e/v7x
        cost_estimate=pl.CostEstimate(
            flops=flops, transcendentals=0, bytes_accessed=bytes_accessed),
    )(state, action, w1s_t, w1a_t, b1_t, w2_t, b2_t, w3_t, b3_t)

    # (1, out_cols) lane-major slab -> (B, 1); padded tail columns discarded.
    return out[0, :B][:, None]


def init_params(key, state_dim, action_dim):
    """PyTorch-Linear-style init U(-1/sqrt(fan_in), +1/sqrt(fan_in)).

    Weights stored as (in_features, out_features); biases as (1, out_features).
    """
    dims = [(state_dim + action_dim, 16), (16, 16), (16, 1)]
    params = []
    for (fan_in, fan_out) in dims:
        key, kw, kb = jax.random.split(key, 3)
        bound = 1.0 / jnp.sqrt(jnp.float32(fan_in))
        w = jax.random.uniform(kw, (fan_in, fan_out), jnp.float32, -bound, bound)
        b = jax.random.uniform(kb, (1, fan_out), jnp.float32, -bound, bound)
        params.extend([w, b])
    return tuple(params)


def critic_reference(state, action, params):
    """Pure-JAX reference for correctness checking."""
    w1, b1, w2, b2, w3, b3 = params
    x = jnp.concatenate([state, action], axis=1)
    h1 = jnp.maximum(x @ w1 + b1, 0.0)
    h2 = jnp.maximum(h1 @ w2 + b2, 0.0)
    return h2 @ w3 + b3


if __name__ == "__main__":
    key = jax.random.PRNGKey(0)
    batch, state_dim, action_dim = 2, 4, 4

    key, ks, ka, kp = jax.random.split(key, 4)
    state = jax.random.normal(ks, (batch, state_dim), jnp.float32)
    action = jax.random.normal(ka, (batch, action_dim), jnp.float32)
    params = init_params(kp, state_dim, action_dim)

    q = jax.block_until_ready(critic_forward(state, action, params))
    q_ref = critic_reference(state, action, params)
    assert q.shape == (batch, 1), q.shape
    assert jnp.allclose(q, q_ref, atol=1e-5, rtol=1e-5), (q, q_ref)

    # Multi-step batch with a ragged tail (2 grid steps; exercises the
    # cdiv/no-pad path and both v7x TensorCores).
    key, ks2, ka2 = jax.random.split(key, 3)
    state2 = jax.random.normal(ks2, (2050, state_dim), jnp.float32)
    action2 = jax.random.normal(ka2, (2050, action_dim), jnp.float32)
    q2 = jax.block_until_ready(critic_forward(state2, action2, params))
    q2_ref = critic_reference(state2, action2, params)
    assert q2.shape == (2050, 1), q2.shape
    assert jnp.allclose(q2, q2_ref, atol=1e-4, rtol=1e-4)

    print("KERNEL_OK")
</pallas_src>

<mosaic_0001>
module attributes {stable_mosaic.version = 11 : i64} {
  func.func @critic_kernel(%arg0: i32, %arg1: memref<128x4xf32, #tpu.memory_space<vmem>>, %arg2: memref<128x4xf32, #tpu.memory_space<vmem>>, %arg3: memref<16x4xf32, #tpu.memory_space<vmem>>, %arg4: memref<16x4xf32, #tpu.memory_space<vmem>>, %arg5: memref<16x1xf32, #tpu.memory_space<vmem>>, %arg6: memref<16x16xf32, #tpu.memory_space<vmem>>, %arg7: memref<16x1xf32, #tpu.memory_space<vmem>>, %arg8: memref<1x16xf32, #tpu.memory_space<vmem>>, %arg9: memref<1x1xf32, #tpu.memory_space<vmem>>, %arg10: memref<1x128xf32, #tpu.memory_space<vmem>>) attributes {dimension_semantics = [#tpu.dimension_semantics<parallel>], iteration_bounds = array<i64: 1>, scalar_prefetch = 0 : i64, scratch_operands = 0 : i64, tpu.core_type = #tpu.core_type<tc>, window_params = [{transform_indices = @transform_0, window_bounds = array<i64: 128, 4>}, {transform_indices = @transform_1, window_bounds = array<i64: 128, 4>}, {pipeline_mode = #tpu.pipeline_mode<synchronous>, transform_indices = @transform_2, window_bounds = array<i64: 16, 4>}, {pipeline_mode = #tpu.pipeline_mode<synchronous>, transform_indices = @transform_3, window_bounds = array<i64: 16, 4>}, {pipeline_mode = #tpu.pipeline_mode<synchronous>, transform_indices = @transform_4, window_bounds = array<i64: 16, 1>}, {pipeline_mode = #tpu.pipeline_mode<synchronous>, transform_indices = @transform_5, window_bounds = array<i64: 16, 16>}, {pipeline_mode = #tpu.pipeline_mode<synchronous>, transform_indices = @transform_6, window_bounds = array<i64: 16, 1>}, {pipeline_mode = #tpu.pipeline_mode<synchronous>, transform_indices = @transform_7, window_bounds = array<i64: 1, 16>}, {pipeline_mode = #tpu.pipeline_mode<synchronous>, transform_indices = @transform_8, window_bounds = array<i64: 1, 1>}, {transform_indices = @transform_9, window_bounds = array<i64: 1, 128>}]} {
    %c0 = arith.constant 0 : index
    %c0_0 = arith.constant 0 : index
    %0 = vector.load %arg1[%c0, %c0_0] : memref<128x4xf32, #tpu.memory_space<vmem>>, vector<128x4xf32>
    %c0_1 = arith.constant 0 : index
    %c0_2 = arith.constant 0 : index
    %1 = vector.load %arg2[%c0_1, %c0_2] : memref<128x4xf32, #tpu.memory_space<vmem>>, vector<128x4xf32>
    %c0_3 = arith.constant 0 : index
    %c0_4 = arith.constant 0 : index
    %2 = vector.load %arg3[%c0_3, %c0_4] : memref<16x4xf32, #tpu.memory_space<vmem>>, vector<16x4xf32>
    %cst = arith.constant dense<0.000000e+00> : vector<16x128xf32>
    %3 = tpu.matmul %2, %0, %cst {dimension_numbers = #tpu.dot_dimension_numbers<[1], [1], [0], [0], [0, 0, 1, 0], [], []>} : vector<16x4xf32>, vector<128x4xf32>, vector<16x128xf32> -> vector<16x128xf32>
    %c0_5 = arith.constant 0 : index
    %c0_6 = arith.constant 0 : index
    %4 = vector.load %arg4[%c0_5, %c0_6] : memref<16x4xf32, #tpu.memory_space<vmem>>, vector<16x4xf32>
    %cst_7 = arith.constant dense<0.000000e+00> : vector<16x128xf32>
    %5 = tpu.matmul %4, %1, %cst_7 {dimension_numbers = #tpu.dot_dimension_numbers<[1], [1], [0], [0], [0, 0, 1, 0], [], []>} : vector<16x4xf32>, vector<128x4xf32>, vector<16x128xf32> -> vector<16x128xf32>
    %6 = arith.addf %3, %5 : vector<16x128xf32>
    %c0_8 = arith.constant 0 : index
    %c0_9 = arith.constant 0 : index
    %7 = vector.load %arg5[%c0_8, %c0_9] : memref<16x1xf32, #tpu.memory_space<vmem>>, vector<16x1xf32>
    %8 = vector.broadcast %7 : vector<16x1xf32> to vector<16x128xf32>
    %9 = arith.addf %6, %8 : vector<16x128xf32>
    %cst_10 = arith.constant 0.000000e+00 : f32
    %10 = vector.broadcast %cst_10 : f32 to vector<16x128xf32>
    %11 = arith.maximumf %9, %10 : vector<16x128xf32>
    %c0_11 = arith.constant 0 : index
    %c0_12 = arith.constant 0 : index
    %12 = vector.load %arg6[%c0_11, %c0_12] : memref<16x16xf32, #tpu.memory_space<vmem>>, vector<16x16xf32>
    %cst_13 = arith.constant dense<0.000000e+00> : vector<16x128xf32>
    %13 = tpu.matmul %12, %11, %cst_13 {dimension_numbers = #tpu.dot_dimension_numbers<[1], [0], [0], [1], [0, 0, 1, 1], [], []>} : vector<16x16xf32>, vector<16x128xf32>, vector<16x128xf32> -> vector<16x128xf32>
    %c0_14 = arith.constant 0 : index
    %c0_15 = arith.constant 0 : index
    %14 = vector.load %arg7[%c0_14, %c0_15] : memref<16x1xf32, #tpu.memory_space<vmem>>, vector<16x1xf32>
    %15 = vector.broadcast %14 : vector<16x1xf32> to vector<16x128xf32>
    %16 = arith.addf %13, %15 : vector<16x128xf32>
    %cst_16 = arith.constant 0.000000e+00 : f32
    %17 = vector.broadcast %cst_16 : f32 to vector<16x128xf32>
    %18 = arith.maximumf %16, %17 : vector<16x128xf32>
    %c0_17 = arith.constant 0 : index
    %c0_18 = arith.constant 0 : index
    %19 = vector.load %arg8[%c0_17, %c0_18] : memref<1x16xf32, #tpu.memory_space<vmem>>, vector<1x16xf32>
    %cst_19 = arith.constant dense<0.000000e+00> : vector<1x128xf32>
    %20 = tpu.matmul %19, %18, %cst_19 {dimension_numbers = #tpu.dot_dimension_numbers<[1], [0], [0], [1], [0, 0, 1, 1], [], []>} : vector<1x16xf32>, vector<16x128xf32>, vector<1x128xf32> -> vector<1x128xf32>
    %c0_20 = arith.constant 0 : index
    %c0_21 = arith.constant 0 : index
    %21 = vector.load %arg9[%c0_20, %c0_21] : memref<1x1xf32, #tpu.memory_space<vmem>>, vector<1x1xf32>
    %22 = vector.broadcast %21 : vector<1x1xf32> to vector<1x128xf32>
    %23 = arith.addf %20, %22 : vector<1x128xf32>
    %c0_22 = arith.constant 0 : index
    %c0_23 = arith.constant 0 : index
    %24 = vector.load %arg10[%c0_22, %c0_23] : memref<1x128xf32, #tpu.memory_space<vmem>>, vector<1x128xf32>
    tpu.vector_store %arg10[%c0_22, %c0_23], %23 {strides = array<i32>} : memref<1x128xf32, #tpu.memory_space<vmem>>, vector<1x128xf32>,
    return
  }
  func.func @transform_0(%arg0: i32) -> (i32, i32) {
    %c0_i32 = arith.constant 0 : i32
    %c0_i32_0 = arith.constant 0 : i32
    return %arg0, %c0_i32 : i32, i32
  }
  func.func @transform_1(%arg0: i32) -> (i32, i32) {
    %c0_i32 = arith.constant 0 : i32
    %c0_i32_0 = arith.constant 0 : i32
    return %arg0, %c0_i32 : i32, i32
  }
  func.func @transform_2(%arg0: i32) -> (i32, i32) {
    %c0_i32 = arith.constant 0 : i32
    %c0_i32_0 = arith.constant 0 : i32
    %c0_i32_1 = arith.constant 0 : i32
    return %c0_i32, %c0_i32_0 : i32, i32
  }
  func.func @transform_3(%arg0: i32) -> (i32, i32) {
    %c0_i32 = arith.constant 0 : i32
    %c0_i32_0 = arith.constant 0 : i32
    %c0_i32_1 = arith.constant 0 : i32
    return %c0_i32, %c0_i32_0 : i32, i32
  }
  func.func @transform_4(%arg0: i32) -> (i32, i32) {
    %c0_i32 = arith.constant 0 : i32
    %c0_i32_0 = arith.constant 0 : i32
    %c0_i32_1 = arith.constant 0 : i32
    return %c0_i32, %c0_i32_0 : i32, i32
  }
  func.func @transform_5(%arg0: i32) -> (i32, i32) {
    %c0_i32 = arith.constant 0 : i32
    %c0_i32_0 = arith.constant 0 : i32
    %c0_i32_1 = arith.constant 0 : i32
    return %c0_i32, %c0_i32_0 : i32, i32
  }
  func.func @transform_6(%arg0: i32) -> (i32, i32) {
    %c0_i32 = arith.constant 0 : i32
    %c0_i32_0 = arith.constant 0 : i32
    %c0_i32_1 = arith.constant 0 : i32
    return %c0_i32, %c0_i32_0 : i32, i32
  }
  func.func @transform_7(%arg0: i32) -> (i32, i32) {
    %c0_i32 = arith.constant 0 : i32
    %c0_i32_0 = arith.constant 0 : i32
    %c0_i32_1 = arith.constant 0 : i32
    return %c0_i32, %c0_i32_0 : i32, i32
  }
  func.func @transform_8(%arg0: i32) -> (i32, i32) {
    %c0_i32 = arith.constant 0 : i32
    %c0_i32_0 = arith.constant 0 : i32
    %c0_i32_1 = arith.constant 0 : i32
    return %c0_i32, %c0_i32_0 : i32, i32
  }
  func.func @transform_9(%arg0: i32) -> (i32, i32) {
    %c0_i32 = arith.constant 0 : i32
    %c0_i32_0 = arith.constant 0 : i32
    return %c0_i32, %arg0 : i32, i32
  }
}

</mosaic_0001>

<bundles_post_ra>
// kernel: tpu_custom_call.1
= control target key start
LH: loop header
LB: loop body
LE: loop exit
PB: predicated region body
PF: predicated region fallthrough
CT: control target
= control target key end

     0   :  { %s632_s0 = inlined_call_operand.vmem [shape: f32[2,4], index: 0, kind: input, shape index: {}]   ;;  %s633_s1 = inlined_call_operand.vmem [shape: f32[2,4], index: 1, kind: input, shape index: {}]   ;;  %s634_s2 = inlined_call_operand.vmem [shape: f32[16,4], index: 2, kind: input, shape index: {}]   ;;  %s635_s3 = inlined_call_operand.vmem [shape: f32[16,4], index: 3, kind: input, shape index: {}]   ;;  %s636_s4 = inlined_call_operand.vmem [shape: f32[16,1], index: 4, kind: input, shape index: {}]   ;;  %s637_s5 = inlined_call_operand.vmem [shape: f32[16,16], index: 5, kind: input, shape index: {}]   ;;  %s638_s6 = inlined_call_operand.vmem [shape: f32[16,1], index: 6, kind: input, shape index: {}]   ;;  %s639_s7 = inlined_call_operand.vmem [shape: f32[1,16], index: 7, kind: input, shape index: {}]   ;;  %s640_s8 = inlined_call_operand.<no memory space> [shape: f32[1,1], index: 8, kind: input, shape index: {}]   ;;  %s641_s9 = inlined_call_operand.hbm [shape: f32[1,128], index: 9, kind: output, shape index: {}]  }
   0x1   :  { %v14_v0 = vstv %s640_s8 }
   0x2   :  { %15 = vst [vmem:[#allocation2] sm:$0x1] %v14_v0 }
   0x3   :  { %v66_v1 = vld [vmem:[%s633_s1 + $0x78] sm:$0xff]  ;;  %vm71_vm0 = vcmask 31744   ;;  %v65_v3 = vld [vmem:[%s633_s1 + $0x70] sm:$0xff]  ;;  %v64_v5 = vld [vmem:[%s633_s1 + $0x68] sm:$0xff] }
   0x4   :  { %v50_v2 = vld [vmem:[%s632_s0 + $0x78] sm:$0xff]  ;;  %336 = vmatpush.xpose.msk.msra.mxu0 %vm71_vm0, %v66_v1  ;;  %v49_v4 = vld [vmem:[%s632_s0 + $0x70] sm:$0xff]  ;;  %v48_v6 = vld [vmem:[%s632_s0 + $0x68] sm:$0xff] }
   0x5   :  { %354 = vmatpush.xpose.msk.msra.mxu1 %vm71_vm0, %v50_v2 }
   0x8   :  { %337 = vmatpush.xpose.msk.msra.mxu0 %vm71_vm0, %v65_v3 }
   0x9   :  { %355 = vmatpush.xpose.msk.msra.mxu1 %vm71_vm0, %v49_v4 }
   0xa   :  { %16 = vsyncpa [#allocation4], 0  ;;  %v63_v7 = vld [vmem:[%s633_s1 + $0x60] sm:$0xff]  ;;  %v62_v9 = vld [vmem:[%s633_s1 + $0x58] sm:$0xff]  ;;  %v406_v22 = vmov 0   ;;  %vm256_vm1 = vcmask 130048  }
   0xb   :  { %v47_v8 = vld [vmem:[%s632_s0 + $0x60] sm:$0xff]  ;;  %v46_v10 = vld [vmem:[%s632_s0 + $0x58] sm:$0xff]  ;;  %v61_v11 = vld [vmem:[%s633_s1 + $0x50] sm:$0xff]  ;;  %377 = vset.pattern.permute.xlu0 %v406_v22  ;;  %378 = vset.pattern.permute.xlu1 %v406_v22  ;;  %s327_s26 = sshll.u32 %s641_s9, 4  ;;  %s328_s26 = int_to_ptr.hbm [resolvable:$true] %s327_s26 }
   0xc   :  { %338 = vmatpush.xpose.msk.msra.mxu0 %vm71_vm0, %v64_v5  ;;  %v45_v12 = vld [vmem:[%s632_s0 + $0x50] sm:$0xff]  ;;  %v60_v13 = vld [vmem:[%s633_s1 + $0x48] sm:$0xff]  ;;  %v59_v15 = vld [vmem:[%s633_s1 + $0x40] sm:$0xff]  ;;  %379 = vset.pattern.permute.xlu2 %v406_v22 }
   0xd   :  { %356 = vmatpush.xpose.msk.msra.mxu1 %vm71_vm0, %v48_v6  ;;  %v44_v14 = vld [vmem:[%s632_s0 + $0x48] sm:$0xff]  ;;  %v43_v16 = vld [vmem:[%s632_s0 + $0x40] sm:$0xff]  ;;  %v58_v17 = vld [vmem:[%s633_s1 + $0x38] sm:$0xff] }
   0xe   :  { %v42_v18 = vld [vmem:[%s632_s0 + $0x38] sm:$0xff]  ;;  %v227_v19 = vld [vmem:[%s636_s4 + $0x8] sm:$0xff]  ;;  %v57_v20 = vld [vmem:[%s633_s1 + $0x30] sm:$0xff] }
   0xf   :  { %v41_v21 = vld [vmem:[%s632_s0 + $0x30] sm:$0xff]  ;;  %235 = vperm.xlu0 %377, %v227_v19   ;;  %v56_v23 = vld [vmem:[%s633_s1 + $0x28] sm:$0xff]  ;;  %v226_v25 = vld [vmem:[%s636_s4] sm:$0xff] }
  0x10   :  { %339 = vmatpush.xpose.msk.msra.mxu0 %vm71_vm0, %v63_v7  ;;  %v40_v24 = vld [vmem:[%s632_s0 + $0x28] sm:$0xff]  ;;  %v55_v26 = vld [vmem:[%s633_s1 + $0x20] sm:$0xff]  ;;  %v54_v28 = vld [vmem:[%s633_s1 + $0x18] sm:$0xff] }
  0x11   :  { %357 = vmatpush.xpose.msk.msra.mxu1 %vm71_vm0, %v47_v8  ;;  %v39_v27 = vld [vmem:[%s632_s0 + $0x20] sm:$0xff]  ;;  %v38_v29 = vld [vmem:[%s632_s0 + $0x18] sm:$0xff]  ;;  %v53_v30 = vld [vmem:[%s633_s1 + $0x10] sm:$0xff] }
  0x12   :  { %v37_v31 = vld [vmem:[%s632_s0 + $0x10] sm:$0xff]  ;;  %v52_v32 = vld [vmem:[%s633_s1 + $0x8] sm:$0xff]  ;;  %v51_v34 = vld [vmem:[%s633_s1] sm:$0xff] }
  0x13   :  { %v36_v33 = vld [vmem:[%s632_s0 + $0x8] sm:$0xff]  ;;  %v35_v35 = vld [vmem:[%s632_s0] sm:$0xff] }
  0x14   :  { %340 = vmatpush.xpose.msk.msra.mxu0 %vm71_vm0, %v62_v9  ;;  %v69_v36 = vld [vmem:[%s635_s3] sm:$0xff]  ;;  %v70_v38 = vld [vmem:[%s635_s3 + $0x8] sm:$0xff] }
  0x15   :  { %358 = vmatpush.xpose.msk.msra.mxu1 %vm71_vm0, %v46_v10  ;;  %v67_v37 = vld [vmem:[%s634_s2] sm:$0xff]  ;;  %v68_v39 = vld [vmem:[%s634_s2 + $0x8] sm:$0xff] }
  0x16   :  { %v245_v40 = vld [vmem:[%s638_s6 + $0x8] sm:$0xff]  ;;  %v244_v44 = vld [vmem:[%s638_s6] sm:$0xff] }
  0x17   :  { %230 = vperm.xlu0 %377, %v226_v25   ;;  %253 = vperm.xlu1 %378, %v245_v40   ;;  %v242_v54 = vld [vmem:[%s637_s5] sm:$0xff]  ;;  %v243_v55 = vld [vmem:[%s637_s5 + $0x8] sm:$0xff]  ;;  %s407_s5 = smov [#allocation3]  }
  0x18   :  { %341 = vmatpush.xpose.msk.msra.mxu0 %vm71_vm0, %v61_v11  ;;  %v289_v56 = vld [vmem:[#allocation2] sm:$0x1]  ;;  %s325_s23 = sshll.u32 %s407_s5, 4  ;;  %s326_s23 = int_to_ptr.vmem [resolvable:$true] %s325_s23 }
  0x19   :  { %359 = vmatpush.xpose.msk.msra.mxu1 %vm71_vm0, %v45_v12  ;;  %292 = vperm.xlu2 %379, %v289_v56   ;;  %v288_v1 = vld [vmem:[%s639_s7] sm:$0x1] }
  0x1c   :  { %342 = vmatpush.xpose.msk.msra.mxu0 %vm71_vm0, %v60_v13 }
  0x1d   :  { %360 = vmatpush.xpose.msk.msra.mxu1 %vm71_vm0, %v44_v14 }
  0x1f   :  { %248 = vperm.xlu1 %378, %v244_v44  }
  0x20   :  { %343 = vmatpush.xpose.msk.msra.mxu0 %vm71_vm0, %v59_v15 }
  0x21   :  { %361 = vmatpush.xpose.msk.msra.mxu1 %vm71_vm0, %v43_v16 }
  0x24   :  { %344 = vmatpush.xpose.msk.msra.mxu0 %vm71_vm0, %v58_v17 }
  0x25   :  { %362 = vmatpush.xpose.msk.msra.mxu1 %vm71_vm0, %v42_v18 }
  0x28   :  { %345 = vmatpush.xpose.msk.msra.mxu0 %vm71_vm0, %v57_v20 }
  0x29   :  { %363 = vmatpush.xpose.msk.msra.mxu1 %vm71_vm0, %v41_v21 }
  0x2c   :  { %346 = vmatpush.xpose.msk.msra.mxu0 %vm71_vm0, %v56_v23 }
  0x2d   :  { %364 = vmatpush.xpose.msk.msra.mxu1 %vm71_vm0, %v40_v24 }
  0x30   :  { %347 = vmatpush.xpose.msk.msra.mxu0 %vm71_vm0, %v55_v26 }
  0x31   :  { %365 = vmatpush.xpose.msk.msra.mxu1 %vm71_vm0, %v39_v27 }
  0x34   :  { %348 = vmatpush.xpose.msk.msra.mxu0 %vm71_vm0, %v54_v28 }
  0x35   :  { %366 = vmatpush.xpose.msk.msra.mxu1 %vm71_vm0, %v38_v29 }
  0x38   :  { %349 = vmatpush.xpose.msk.msra.mxu0 %vm71_vm0, %v53_v30 }
  0x39   :  { %367 = vmatpush.xpose.msk.msra.mxu1 %vm71_vm0, %v37_v31 }
  0x3c   :  { %350 = vmatpush.xpose.msk.msra.mxu0 %vm71_vm0, %v52_v32 }
  0x3d   :  { %368 = vmatpush.xpose.msk.msra.mxu1 %vm71_vm0, %v36_v33 }
  0x40   :  { %351 = vmatpush.xpose.msk.msra.mxu0 %vm71_vm0, %v51_v34 }
  0x41   :  { %369 = vmatpush.xpose.msk.msra.mxu1 %vm71_vm0, %v35_v35 }
  0x43   :  { %352 = vmatmul.msk.f32.vlgmr.msra.gmra.mxu0 %vm71_vm0, %v69_v36 }
  0x44   :  { %370 = vmatmul.msk.f32.vlgmr.msra.gmra.mxu1 %vm71_vm0, %v67_v37 }
  0x4b   :  { %353 = vmatmul.msk.f32.gmra.mxu0 %vm71_vm0, %v70_v38 }
  0x4c   :  { %371 = vmatmul.msk.f32.gmra.mxu1 %vm71_vm0, %v68_v39 }
  0x73   :  { %v293_v2 = vpop.permute.xlu2 %292 }
  0x74   :  { %v295_v3 = vperm.slane %v293_v2, 0 }
  0x81   :  { %v236_v41 = vpop.permute.xlu0 %235 }
  0x89   :  { %v231_v46 = vpop.permute.xlu0 %230  ;;  %v254_v57 = vpop.permute.xlu1 %253 }
  0x91   :  { %v249_v59 = vpop.permute.xlu1 %248 }
  0xc0   :  { %v143_v42 = vpop.f32.mrf.mxu0 }
  0xc1   :  { %v220_v43 = vpop.f32.mrf.mxu1 }
  0xc2   :  { %v221_v45 = vadd.f32 %v220_v43, %v143_v42 }
  0xc4   :  { %v238_v50 = vadd.f32 %v231_v46, %v221_v45 }
  0xc6   :  { %v240_v53 = vmax.f32 %v238_v50, 0.0 }
  0xc8   :  { %v146_v47 = vpop.f32.mrf.mxu0 }
  0xc9   :  { %v223_v48 = vpop.f32.mrf.mxu1 }
  0xca   :  { %v224_v49 = vadd.f32 %v223_v48, %v146_v47 }
  0xcc   :  { %v239_v51 = vadd.f32 %v236_v41, %v224_v49 }
  0xce   :  { %v241_v52 = vmax.f32 %v239_v51, 0.0 }
  0xd0   :  { %277 = vmatpush.msra.mxu2 %v241_v52 }
  0xd2   :  { %278 = vmatpush.msra.mxu2 %v240_v53 }
  0xd3   :  { %372 = vmatmul.msk.f32.vlgmr.msra.gmra.mxu2 %vm256_vm1, %v242_v54 }
  0xdb   :  { %373 = vmatmul.msk.f32.gmra.mxu2 %vm256_vm1, %v243_v55 }
 0x156   :  { %v280_v58 = vpop.f32.mrf.mxu2 }
 0x157   :  { %v281_v61 = vadd.f32 %v280_v58, %v249_v59 }
 0x159   :  { %v286_v0 = vmax.f32 %v281_v61, 0.0 }
 0x15e   :  { %v283_v60 = vpop.f32.mrf.mxu2 }
 0x15f   :  { %v284_v62 = vadd.f32 %v283_v60, %v254_v57 }
 0x161   :  { %v287_v63 = vmax.f32 %v284_v62, 0.0 }
 0x163   :  { %313 = vmatpush.msra.mxu3 %v287_v63 }
 0x165   :  { %314 = vmatpush.msra.mxu3 %v286_v0 }
 0x166   :  { %374 = vmatmul.msk.f32.vlgmr.msra.gmra.mxu3 %vm256_vm1, %v288_v1 }
 0x1e9   :  { %v316_v4 = vpop.f32.mrf.mxu3 }
 0x1ea   :  { %v317_v5 = vadd.f32 %v316_v4, %v295_v3 }
 0x1ec   :  { %319 = vst [vmem:[#allocation3] sm:$0x1] %v317_v5 }
 0x1ed   :  { %330 = dma.vmem_to_hbm [thread:$0]  %s326_s23, 16, %s328_s26, [#allocation4]  }
 0x1ee   :  { %404 = dma.done.wait [#allocation4], 16  }
 0x1ef   :  { %405 = vsyncadd [#allocation4], 4294967280 }
 0x1f0   :  { %335 = vsyncpa [#allocation4], 1 }

</bundles_post_ra>
